<compile_context>
chip_gen: v5e
topology: v5e:2x2
jax: 0.10.0
libtpu: 0.0.40
codegen_flags: <defaults>
</compile_context>

<pallas_src>
import jax
import jax.numpy as jnp
from jax.experimental import pallas as pl
from jax.experimental.pallas import tpu as pltpu


def _round_up(n, m):
    return ((n + m - 1) // m) * m


def _fused_mlp_kernel(x_ref, w_ref, b_ref, o_ref):
    # y = x @ W + b  (the two Linear layers are pre-fused in the wrapper;
    # Dropout is identity at inference).
    y = jnp.dot(x_ref[...], w_ref[...], preferred_element_type=jnp.float32)
    o_ref[...] = (y + b_ref[...]).astype(o_ref.dtype)


def poisson_like_forward(x, w1, b1, w2, b2, *, block_batch=1024,
                         compute_dtype=jnp.bfloat16):
    """Eval-mode PoissonLike forward.

    x:  (B, n_channel) f32
    w1: (n_channel, n_hidden) f32, b1: (1, n_hidden) f32
    w2: (n_hidden, n_output) f32,  b2: (1, n_output) f32
    Returns (B, n_output) f32.
    """
    B, n_channel = x.shape
    n_output = w2.shape[1]

    # ---- Fuse the two activation-free linears (done once, outside the grid).
    w = w1 @ w2            # (n_channel, n_output) f32
    b = b1 @ w2 + b2       # (1, n_output) f32

    # ---- Pad output feature dim to a lane-dense multiple of 128.
    n_out_pad = _round_up(max(n_output, 128), 128)
    if n_out_pad != n_output:
        w = jnp.pad(w, ((0, 0), (0, n_out_pad - n_output)))
        b = jnp.pad(b, ((0, 0), (0, n_out_pad - n_output)))

    # ---- Pick a large batch tile; pad batch so the grid divides evenly.
    tm = min(block_batch, _round_up(B, 8))   # multiple of 8, at most block_batch
    B_pad = _round_up(B, tm)
    if B_pad != B:
        x = jnp.pad(x, ((0, B_pad - B), (0, 0)))

    # ---- bf16 streaming inputs, f32 accumulation / bias / output.
    x_c = x.astype(compute_dtype)
    w_c = w.astype(compute_dtype)
    b_f32 = b.astype(jnp.float32)

    grid = (B_pad // tm,)
    out = pl.pallas_call(
        _fused_mlp_kernel,
        out_shape=jax.ShapeDtypeStruct((B_pad, n_out_pad), jnp.float32),
        grid_spec=pl.GridSpec(
            grid=grid,
            in_specs=[
                # batch tile of the input
                pl.BlockSpec((tm, n_channel), lambda i: (i, 0)),
                # fused parameters: constant index_map -> VMEM-resident, no re-DMA
                pl.BlockSpec((n_channel, n_out_pad), lambda i: (0, 0)),
                pl.BlockSpec((1, n_out_pad), lambda i: (0, 0)),
            ],
            out_specs=pl.BlockSpec((tm, n_out_pad), lambda i: (i, 0)),
        ),
        compiler_params=pltpu.CompilerParams(
            dimension_semantics=("parallel",),
        ),
    )(x_c, w_c, b_f32)

    return out[:B, :n_output]


def init_params(key, n_channel, n_hidden, n_output, std=0.01):
    """Matches PoissonLike.initialize(): normal(std=0.01) weights, zero biases."""
    k1, k2 = jax.random.split(key)
    # stored as (in, out) == PyTorch weight.T
    w1 = std * jax.random.normal(k1, (n_channel, n_hidden), dtype=jnp.float32)
    b1 = jnp.zeros((1, n_hidden), dtype=jnp.float32)
    w2 = std * jax.random.normal(k2, (n_hidden, n_output), dtype=jnp.float32)
    b2 = jnp.zeros((1, n_output), dtype=jnp.float32)
    return w1, b1, w2, b2


if __name__ == "__main__":
    # Module defaults: n_channel=96, n_hidden=100, n_output=51 (already small).
    n_channel, n_hidden, n_output = 96, 100, 51
    batch = 8

    key = jax.random.PRNGKey(0)
    kx, kp = jax.random.split(key)
    x = jax.random.normal(kx, (batch, n_channel), dtype=jnp.float32)
    w1, b1, w2, b2 = init_params(kp, n_channel, n_hidden, n_output, std=0.01)

    # Pure-JAX reference of the same forward pass (eval mode).
    ref = (x @ w1 + b1) @ w2 + b2

    # 1) f32 compute path: tight tolerance vs reference (fusion only changes
    #    association order, so results match to f32 roundoff).
    out_f32 = poisson_like_forward(x, w1, b1, w2, b2,
                                   compute_dtype=jnp.float32)
    out_f32 = jax.block_until_ready(out_f32)
    assert out_f32.shape == (batch, n_output)
    assert jnp.allclose(out_f32, ref, atol=1e-5, rtol=1e-5), "f32 mismatch vs reference"

    # 2) bf16 streaming path (the performance default): looser tolerance.
    out_bf16 = poisson_like_forward(x, w1, b1, w2, b2,
                                    compute_dtype=jnp.bfloat16)
    out_bf16 = jax.block_until_ready(out_bf16)
    assert out_bf16.shape == (batch, n_output)
    assert jnp.allclose(out_bf16, ref, atol=5e-4, rtol=5e-2), "bf16 mismatch vs reference"

    # 3) Awkward batch size exercises the cdiv + batch-padding path.
    x_odd = jax.random.normal(kx, (5, n_channel), dtype=jnp.float32)
    ref_odd = (x_odd @ w1 + b1) @ w2 + b2
    out_odd = poisson_like_forward(x_odd, w1, b1, w2, b2,
                                   compute_dtype=jnp.float32)
    out_odd = jax.block_until_ready(out_odd)
    assert out_odd.shape == (5, n_output)
    assert jnp.allclose(out_odd, ref_odd, atol=1e-5, rtol=1e-5), "odd-batch mismatch"

    print("KERNEL_OK")
</pallas_src>

<mosaic_0001>
module attributes {stable_mosaic.version = 11 : i64} {
  func.func @_fused_mlp_kernel(%arg0: i32, %arg1: memref<8x96xf32, #tpu.memory_space<vmem>>, %arg2: memref<96x128xf32, #tpu.memory_space<vmem>>, %arg3: memref<1x128xf32, #tpu.memory_space<vmem>>, %arg4: memref<8x128xf32, #tpu.memory_space<vmem>>) attributes {dimension_semantics = [#tpu.dimension_semantics<parallel>], iteration_bounds = array<i64: 1>, scalar_prefetch = 0 : i64, scratch_operands = 0 : i64, tpu.core_type = #tpu.core_type<tc>, window_params = [{transform_indices = @transform_0, window_bounds = array<i64: 8, 96>}, {pipeline_mode = #tpu.pipeline_mode<synchronous>, transform_indices = @transform_1, window_bounds = array<i64: 96, 128>}, {pipeline_mode = #tpu.pipeline_mode<synchronous>, transform_indices = @transform_2, window_bounds = array<i64: 1, 128>}, {transform_indices = @transform_3, window_bounds = array<i64: 8, 128>}]} {
    %c0 = arith.constant 0 : index
    %c0_0 = arith.constant 0 : index
    %0 = vector.load %arg1[%c0, %c0_0] : memref<8x96xf32, #tpu.memory_space<vmem>>, vector<8x96xf32>
    %c0_1 = arith.constant 0 : index
    %c0_2 = arith.constant 0 : index
    %1 = vector.load %arg2[%c0_1, %c0_2] : memref<96x128xf32, #tpu.memory_space<vmem>>, vector<96x128xf32>
    %cst = arith.constant dense<0.000000e+00> : vector<8x128xf32>
    %2 = tpu.matmul %0, %1, %cst {dimension_numbers = #tpu.dot_dimension_numbers<[1], [0], [0], [1], [0, 0, 1, 1], [], []>} : vector<8x96xf32>, vector<96x128xf32>, vector<8x128xf32> -> vector<8x128xf32>
    %c0_3 = arith.constant 0 : index
    %c0_4 = arith.constant 0 : index
    %3 = vector.load %arg3[%c0_3, %c0_4] : memref<1x128xf32, #tpu.memory_space<vmem>>, vector<1x128xf32>
    %4 = vector.broadcast %3 : vector<1x128xf32> to vector<8x128xf32>
    %5 = arith.addf %2, %4 : vector<8x128xf32>
    %c0_5 = arith.constant 0 : index
    %c0_6 = arith.constant 0 : index
    %6 = vector.load %arg4[%c0_5, %c0_6] : memref<8x128xf32, #tpu.memory_space<vmem>>, vector<8x128xf32>
    tpu.vector_store %arg4[%c0_5, %c0_6], %5 {strides = array<i32>} : memref<8x128xf32, #tpu.memory_space<vmem>>, vector<8x128xf32>,
    return
  }
  func.func @transform_0(%arg0: i32) -> (i32, i32) {
    %c0_i32 = arith.constant 0 : i32
    %c0_i32_0 = arith.constant 0 : i32
    return %arg0, %c0_i32 : i32, i32
  }
  func.func @transform_1(%arg0: i32) -> (i32, i32) {
    %c0_i32 = arith.constant 0 : i32
    %c0_i32_0 = arith.constant 0 : i32
    %c0_i32_1 = arith.constant 0 : i32
    return %c0_i32, %c0_i32_0 : i32, i32
  }
  func.func @transform_2(%arg0: i32) -> (i32, i32) {
    %c0_i32 = arith.constant 0 : i32
    %c0_i32_0 = arith.constant 0 : i32
    %c0_i32_1 = arith.constant 0 : i32
    return %c0_i32, %c0_i32_0 : i32, i32
  }
  func.func @transform_3(%arg0: i32) -> (i32, i32) {
    %c0_i32 = arith.constant 0 : i32
    %c0_i32_0 = arith.constant 0 : i32
    return %arg0, %c0_i32 : i32, i32
  }
}

</mosaic_0001>

<bundles_post_ra>
// kernel: tpu_custom_call.1
= control target key start
LH: loop header
LB: loop body
LE: loop exit
PB: predicated region body
PF: predicated region fallthrough
CT: control target
= control target key end

     0   :  { %8 = vsyncpa [#allocation3], 0  ;;  %s227_s0 = inlined_call_operand.hbm [shape: f32[8,96], index: 0, kind: input, shape index: {}]   ;;  %s228_s1 = inlined_call_operand.hbm [shape: f32[96,128], index: 1, kind: input, shape index: {}]   ;;  %s229_s2 = inlined_call_operand.vmem [shape: f32[1,128], index: 2, kind: input, shape index: {}]   ;;  %s230_s3 = inlined_call_operand.hbm [shape: f32[8,128], index: 3, kind: output, shape index: {}]  }
   0x1   :  { %9 = vsyncpa [#allocation6], 0 }
   0x2   :  { %10 = vsyncpa [#allocation4], 0  ;;  %s16_s14 = sshll.u32 %s227_s0, 4  ;;  %s190_s15 = smov [#allocation2]   ;;  %s17_s14 = int_to_ptr.hbm [resolvable:$true] %s16_s14 }
   0x3   :  { %s18_s16 = sshll.u32 %s190_s15, 4  ;;  %s26_s19 = sshll.u32 %s228_s1, 4  ;;  %s19_s16 = int_to_ptr.vmem [resolvable:$true] %s18_s16  ;;  %s27_s19 = int_to_ptr.hbm [resolvable:$true] %s26_s19 }
   0x4   :  { %21 = dma.hbm_to_vmem [thread:$0]  %s17_s14, 128, %s19_s16, [#allocation3]  }
   0x5   :  { %s191_s20 = smov [#allocation5]   ;;  %s192_s22 = smov 128  }
   0x6   :  { %s28_s21 = sshll.u32 %s191_s20, 4  ;;  %s193_s23 = smov 8   ;;  %s29_s21 = int_to_ptr.vmem [resolvable:$true] %s28_s21 }
   0x7   :  { %34 = dma.hbm_to_vmem [thread:$0]  %s27_s19, 1536, %s29_s21, [#allocation6], %s192_s22, %s192_s22, %s193_s23  }
   0x8   :  { %184 = dma.done.wait [#allocation3], 128  }
   0x9   :  { %185 = vsyncadd [#allocation3], 4294967168 }
   0xa   :  { %186 = dma.done.wait [#allocation6], 1536  }
   0xb   :  { %187 = vsyncadd [#allocation6], 4294965760  ;;  %v57_v0 = vld [vmem:[#allocation5 + $0x58] sm:$0xff]  ;;  %v56_v1 = vld [vmem:[#allocation5 + $0x50] sm:$0xff]  ;;  %vm62_vm0 = vcmask 785408   ;;  %s194_s24 = smov [#allocation7]  }
   0xc   :  { %70 = vmatpush.msra.mxu0 %v57_v0  ;;  %v55_v2 = vld [vmem:[#allocation5 + $0x48] sm:$0xff]  ;;  %v54_v3 = vld [vmem:[#allocation5 + $0x40] sm:$0xff]  ;;  %v53_v4 = vld [vmem:[#allocation5 + $0x38] sm:$0xff]  ;;  %s92_s25 = sshll.u32 %s194_s24, 4  ;;  %s94_s28 = sshll.u32 %s230_s3, 4  ;;  %s93_s25 = int_to_ptr.vmem [resolvable:$true] %s92_s25  ;;  %s95_s28 = int_to_ptr.hbm [resolvable:$true] %s94_s28 }
   0xd   :  { %v52_v5 = vld [vmem:[#allocation5 + $0x30] sm:$0xff]  ;;  %v51_v6 = vld [vmem:[#allocation5 + $0x28] sm:$0xff]  ;;  %v50_v7 = vld [vmem:[#allocation5 + $0x20] sm:$0xff] }
   0xe   :  { %71 = vmatpush.msra.mxu0 %v56_v1  ;;  %v49_v8 = vld [vmem:[#allocation5 + $0x18] sm:$0xff]  ;;  %v48_v9 = vld [vmem:[#allocation5 + $0x10] sm:$0xff]  ;;  %v47_v10 = vld [vmem:[#allocation5 + $0x8] sm:$0xff] }
   0xf   :  { %v46_v11 = vld [vmem:[#allocation5] sm:$0xff]  ;;  %v45_v12 = vld [vmem:[#allocation2] sm:$0xff] }
  0x10   :  { %72 = vmatpush.msra.mxu0 %v55_v2  ;;  %v111_v13 = vld [vmem:[%s229_s2] ss:$0 sm:$0xff] }
  0x12   :  { %73 = vmatpush.msra.mxu0 %v54_v3 }
  0x14   :  { %74 = vmatpush.msra.mxu0 %v53_v4 }
  0x16   :  { %75 = vmatpush.msra.mxu0 %v52_v5 }
  0x18   :  { %76 = vmatpush.msra.mxu0 %v51_v6 }
  0x1a   :  { %77 = vmatpush.msra.mxu0 %v50_v7 }
  0x1c   :  { %78 = vmatpush.msra.mxu0 %v49_v8 }
  0x1e   :  { %79 = vmatpush.msra.mxu0 %v48_v9 }
  0x20   :  { %80 = vmatpush.msra.mxu0 %v47_v10 }
  0x22   :  { %81 = vmatpush.msra.mxu0 %v46_v11 }
  0x23   :  { %105 = vmatmul.msk.f32.vlgmr.msra.gmra.mxu0 %vm62_vm0, %v45_v12 }
  0xa0   :  { %v83_v14 = vpop.f32.mrf.mxu0 }
  0xa1   :  { %v84_v15 = vadd.f32 %v111_v13, %v83_v14 }
  0xa3   :  { %86 = vst [vmem:[#allocation7] sm:$0xff] %v84_v15 }
  0xa4   :  { %97 = dma.vmem_to_hbm [thread:$0]  %s93_s25, 128, %s95_s28, [#allocation4]  }
  0xa5   :  { %188 = dma.done.wait [#allocation4], 128  }
  0xa6   :  { %189 = vsyncadd [#allocation4], 4294967168 }
  0xa7   :  { %102 = vsyncpa [#allocation3], 1 }
  0xa8   :  { %103 = vsyncpa [#allocation6], 1 }
  0xa9   :  { %104 = vsyncpa [#allocation4], 1 }

</bundles_post_ra>
